<compile_context>
chip_gen: v7x
topology: tpu7x:2x2x1
jax: 0.10.0
libtpu: 0.0.40
codegen_flags: <defaults>
</compile_context>

<pallas_src>
import jax
import jax.numpy as jnp
import numpy as np
from jax.experimental import pallas as pl
from jax.experimental.pallas import tpu as pltpu

HIDDEN = 64


def _round_up(x, m):
    return (x + m - 1) // m * m


def _orthogonal(key, shape, gain):
    """Deterministic orthogonal init (matches torch.nn.init.orthogonal_ semantics)."""
    rows, cols = shape
    n = max(rows, cols)
    a = jax.random.normal(key, (n, n), dtype=jnp.float32)
    q, r = jnp.linalg.qr(a)
    d = jnp.diag(r)
    q = q * jnp.where(d == 0, 1.0, jnp.sign(d))[None, :]   # guard exact-zero diag
    return (gain * q[:rows, :cols]).astype(jnp.float32)


def init_policy_params(key, state_dim, action_dim):
    k1, k2, k3 = jax.random.split(key, 3)
    # PyTorch Linear weight is (out, in); we store transposed (in, out).
    w1 = _orthogonal(k1, (HIDDEN, state_dim), gain=np.sqrt(2)).T       # (state_dim, 64)
    b1 = jnp.zeros((1, HIDDEN), jnp.float32)
    w2 = _orthogonal(k2, (HIDDEN, HIDDEN), gain=np.sqrt(2)).T          # (64, 64)
    b2 = jnp.zeros((1, HIDDEN), jnp.float32)
    w3 = _orthogonal(k3, (action_dim, HIDDEN), gain=0.01).T            # (64, action_dim)
    b3 = jnp.zeros((1, action_dim), jnp.float32)
    # actor_logstd = log(ones(action_dim)) = zeros
    logstd = jnp.zeros((1, action_dim), jnp.float32)
    return (w1, b1, w2, b2, w3, b3, logstd)


def policy_kernel(x_ref, w1_ref, b1_ref, w2_ref, b2_ref, w3_ref, b3_ref, mean_ref):
    # All-f32 path: MXU matmuls with f32 accumulation, tanh on EUP in f32.
    h1 = jnp.tanh(jnp.dot(x_ref[...], w1_ref[...],
                          preferred_element_type=jnp.float32) + b1_ref[...])
    h2 = jnp.tanh(jnp.dot(h1, w2_ref[...],
                          preferred_element_type=jnp.float32) + b2_ref[...])
    # Narrow (tile_b, action_dim) store: masked vst for small action_dim is far
    # cheaper than a 128-lane padded f32 writeback + wrapper slice.
    mean_ref[...] = jnp.dot(h2, w3_ref[...],
                            preferred_element_type=jnp.float32) + b3_ref[...]


def _choose_tiling(batch, cap=2048):
    """Pick (tile_b, b_pad, n_tiles): tile_b multiple of 8, tile_b * n_tiles == b_pad."""
    b_pad = _round_up(batch, 8)
    if b_pad <= cap:
        # Medium/large batches get >= 2 tiles so v7x can shard both TensorCores;
        # tiny batches stay single-tile (avoids useless padded rows / grid steps).
        n_tiles = 2 if b_pad >= 256 else 1
    else:
        n_tiles = pl.cdiv(b_pad, cap)
    tile_b = _round_up(pl.cdiv(b_pad, n_tiles), 8)
    b_pad = tile_b * n_tiles
    return tile_b, b_pad, n_tiles


@jax.jit
def policy_forward(state, params):
    w1, b1, w2, b2, w3, b3, logstd = params
    B, state_dim = state.shape
    action_dim = w3.shape[1]

    tile_b, b_pad, n_tiles = _choose_tiling(B)

    # Feed f32 state directly (no wrapper cast pass); pad batch tail only if needed.
    x = state if b_pad == B else jnp.pad(state, ((0, b_pad - B), (0, 0)))

    def resident(shape):
        # Whole array in VMEM; block index constant across the batch grid, so
        # Pallas skips re-DMA after the first step.
        return pl.BlockSpec(shape, lambda i: (0, 0))

    mean_full = pl.pallas_call(
        policy_kernel,
        out_shape=jax.ShapeDtypeStruct((b_pad, action_dim), jnp.float32),
        grid=(n_tiles,),
        in_specs=[
            pl.BlockSpec((tile_b, state_dim), lambda i: (i, 0)),   # streamed state tile
            resident(w1.shape), resident(b1.shape),
            resident(w2.shape), resident(b2.shape),
            resident(w3.shape), resident(b3.shape),
        ],
        out_specs=pl.BlockSpec((tile_b, action_dim), lambda i: (i, 0)),
        compiler_params=pltpu.CompilerParams(
            dimension_semantics=("parallel",)),                    # v7x: shard tiles across TCs
    )(x, w1, b1, w2, b2, w3, b3)

    mean = mean_full if b_pad == B else mean_full[:B]
    # std is constant per call: compute once and broadcast lazily (no kernel writeback).
    std = jnp.broadcast_to(jnp.exp(logstd), mean.shape)
    return mean, std
    # TODO(synk): if a profile shows exposed DMA on the streamed state once the
    # body shrinks, add pipeline_mode=pl.Buffered(3) to the state BlockSpec.


def policy_forward_ref(state, params):
    """Pure-JAX reference in f32 (mirrors the kernel numerics and the PyTorch module)."""
    w1, b1, w2, b2, w3, b3, logstd = params
    h1 = jnp.tanh(jnp.dot(state, w1, preferred_element_type=jnp.float32) + b1)
    h2 = jnp.tanh(jnp.dot(h1, w2, preferred_element_type=jnp.float32) + b2)
    mean = jnp.dot(h2, w3, preferred_element_type=jnp.float32) + b3
    std = jnp.broadcast_to(jnp.exp(logstd), mean.shape)
    return mean, std


if __name__ == "__main__":
    key = jax.random.PRNGKey(0)
    k_param, k_state = jax.random.split(key)

    B, state_dim, action_dim = 8, 32, 8
    params = init_policy_params(k_param, state_dim, action_dim)
    state = jax.random.normal(k_state, (B, state_dim), dtype=jnp.float32)

    mean, std = policy_forward(state, params)
    jax.block_until_ready((mean, std))

    mean_ref, std_ref = policy_forward_ref(state, params)
    np.testing.assert_allclose(np.asarray(mean), np.asarray(mean_ref),
                               rtol=1e-2, atol=2e-3)
    np.testing.assert_allclose(np.asarray(std), np.asarray(std_ref),
                               rtol=1e-6, atol=1e-6)
    assert mean.shape == (B, action_dim) and std.shape == (B, action_dim)

    print("KERNEL_OK")
</pallas_src>

<mosaic_0001>
module attributes {stable_mosaic.version = 11 : i64} {
  func.func @policy_kernel(%arg0: i32, %arg1: memref<8x32xf32, #tpu.memory_space<vmem>>, %arg2: memref<32x64xf32, #tpu.memory_space<vmem>>, %arg3: memref<1x64xf32, #tpu.memory_space<vmem>>, %arg4: memref<64x64xf32, #tpu.memory_space<vmem>>, %arg5: memref<1x64xf32, #tpu.memory_space<vmem>>, %arg6: memref<64x8xf32, #tpu.memory_space<vmem>>, %arg7: memref<1x8xf32, #tpu.memory_space<vmem>>, %arg8: memref<8x8xf32, #tpu.memory_space<vmem>>) attributes {dimension_semantics = [#tpu.dimension_semantics<parallel>], iteration_bounds = array<i64: 1>, scalar_prefetch = 0 : i64, scratch_operands = 0 : i64, tpu.core_type = #tpu.core_type<tc>, window_params = [{transform_indices = @transform_0, window_bounds = array<i64: 8, 32>}, {pipeline_mode = #tpu.pipeline_mode<synchronous>, transform_indices = @transform_1, window_bounds = array<i64: 32, 64>}, {pipeline_mode = #tpu.pipeline_mode<synchronous>, transform_indices = @transform_2, window_bounds = array<i64: 1, 64>}, {pipeline_mode = #tpu.pipeline_mode<synchronous>, transform_indices = @transform_3, window_bounds = array<i64: 64, 64>}, {pipeline_mode = #tpu.pipeline_mode<synchronous>, transform_indices = @transform_4, window_bounds = array<i64: 1, 64>}, {pipeline_mode = #tpu.pipeline_mode<synchronous>, transform_indices = @transform_5, window_bounds = array<i64: 64, 8>}, {pipeline_mode = #tpu.pipeline_mode<synchronous>, transform_indices = @transform_6, window_bounds = array<i64: 1, 8>}, {transform_indices = @transform_7, window_bounds = array<i64: 8, 8>}]} {
    %c0 = arith.constant 0 : index
    %c0_0 = arith.constant 0 : index
    %0 = vector.load %arg1[%c0, %c0_0] : memref<8x32xf32, #tpu.memory_space<vmem>>, vector<8x32xf32>
    %c0_1 = arith.constant 0 : index
    %c0_2 = arith.constant 0 : index
    %1 = vector.load %arg2[%c0_1, %c0_2] : memref<32x64xf32, #tpu.memory_space<vmem>>, vector<32x64xf32>
    %cst = arith.constant dense<0.000000e+00> : vector<8x64xf32>
    %2 = tpu.matmul %0, %1, %cst {dimension_numbers = #tpu.dot_dimension_numbers<[1], [0], [0], [1], [0, 0, 1, 1], [], []>} : vector<8x32xf32>, vector<32x64xf32>, vector<8x64xf32> -> vector<8x64xf32>
    %c0_3 = arith.constant 0 : index
    %c0_4 = arith.constant 0 : index
    %3 = vector.load %arg3[%c0_3, %c0_4] : memref<1x64xf32, #tpu.memory_space<vmem>>, vector<1x64xf32>
    %4 = vector.broadcast %3 : vector<1x64xf32> to vector<8x64xf32>
    %5 = arith.addf %2, %4 : vector<8x64xf32>
    %6 = math.tanh %5 : vector<8x64xf32>
    %c0_5 = arith.constant 0 : index
    %c0_6 = arith.constant 0 : index
    %7 = vector.load %arg4[%c0_5, %c0_6] : memref<64x64xf32, #tpu.memory_space<vmem>>, vector<64x64xf32>
    %cst_7 = arith.constant dense<0.000000e+00> : vector<8x64xf32>
    %8 = tpu.matmul %6, %7, %cst_7 {dimension_numbers = #tpu.dot_dimension_numbers<[1], [0], [0], [1], [0, 0, 1, 1], [], []>} : vector<8x64xf32>, vector<64x64xf32>, vector<8x64xf32> -> vector<8x64xf32>
    %c0_8 = arith.constant 0 : index
    %c0_9 = arith.constant 0 : index
    %9 = vector.load %arg5[%c0_8, %c0_9] : memref<1x64xf32, #tpu.memory_space<vmem>>, vector<1x64xf32>
    %10 = vector.broadcast %9 : vector<1x64xf32> to vector<8x64xf32>
    %11 = arith.addf %8, %10 : vector<8x64xf32>
    %12 = math.tanh %11 : vector<8x64xf32>
    %c0_10 = arith.constant 0 : index
    %c0_11 = arith.constant 0 : index
    %13 = vector.load %arg6[%c0_10, %c0_11] : memref<64x8xf32, #tpu.memory_space<vmem>>, vector<64x8xf32>
    %cst_12 = arith.constant dense<0.000000e+00> : vector<8x8xf32>
    %14 = tpu.matmul %12, %13, %cst_12 {dimension_numbers = #tpu.dot_dimension_numbers<[1], [0], [0], [1], [0, 0, 1, 1], [], []>} : vector<8x64xf32>, vector<64x8xf32>, vector<8x8xf32> -> vector<8x8xf32>
    %c0_13 = arith.constant 0 : index
    %c0_14 = arith.constant 0 : index
    %15 = vector.load %arg7[%c0_13, %c0_14] : memref<1x8xf32, #tpu.memory_space<vmem>>, vector<1x8xf32>
    %16 = vector.broadcast %15 : vector<1x8xf32> to vector<8x8xf32>
    %17 = arith.addf %14, %16 : vector<8x8xf32>
    %c0_15 = arith.constant 0 : index
    %c0_16 = arith.constant 0 : index
    %18 = vector.load %arg8[%c0_15, %c0_16] : memref<8x8xf32, #tpu.memory_space<vmem>>, vector<8x8xf32>
    tpu.vector_store %arg8[%c0_15, %c0_16], %17 {strides = array<i32>} : memref<8x8xf32, #tpu.memory_space<vmem>>, vector<8x8xf32>,
    return
  }
  func.func @transform_0(%arg0: i32) -> (i32, i32) {
    %c0_i32 = arith.constant 0 : i32
    %c0_i32_0 = arith.constant 0 : i32
    return %arg0, %c0_i32 : i32, i32
  }
  func.func @transform_1(%arg0: i32) -> (i32, i32) {
    %c0_i32 = arith.constant 0 : i32
    %c0_i32_0 = arith.constant 0 : i32
    %c0_i32_1 = arith.constant 0 : i32
    return %c0_i32, %c0_i32_0 : i32, i32
  }
  func.func @transform_2(%arg0: i32) -> (i32, i32) {
    %c0_i32 = arith.constant 0 : i32
    %c0_i32_0 = arith.constant 0 : i32
    %c0_i32_1 = arith.constant 0 : i32
    return %c0_i32, %c0_i32_0 : i32, i32
  }
  func.func @transform_3(%arg0: i32) -> (i32, i32) {
    %c0_i32 = arith.constant 0 : i32
    %c0_i32_0 = arith.constant 0 : i32
    %c0_i32_1 = arith.constant 0 : i32
    return %c0_i32, %c0_i32_0 : i32, i32
  }
  func.func @transform_4(%arg0: i32) -> (i32, i32) {
    %c0_i32 = arith.constant 0 : i32
    %c0_i32_0 = arith.constant 0 : i32
    %c0_i32_1 = arith.constant 0 : i32
    return %c0_i32, %c0_i32_0 : i32, i32
  }
  func.func @transform_5(%arg0: i32) -> (i32, i32) {
    %c0_i32 = arith.constant 0 : i32
    %c0_i32_0 = arith.constant 0 : i32
    %c0_i32_1 = arith.constant 0 : i32
    return %c0_i32, %c0_i32_0 : i32, i32
  }
  func.func @transform_6(%arg0: i32) -> (i32, i32) {
    %c0_i32 = arith.constant 0 : i32
    %c0_i32_0 = arith.constant 0 : i32
    %c0_i32_1 = arith.constant 0 : i32
    return %c0_i32, %c0_i32_0 : i32, i32
  }
  func.func @transform_7(%arg0: i32) -> (i32, i32) {
    %c0_i32 = arith.constant 0 : i32
    %c0_i32_0 = arith.constant 0 : i32
    return %arg0, %c0_i32 : i32, i32
  }
}

</mosaic_0001>

<bundles_post_ra>
// kernel: policy_forward.1
= control target key start
LH: loop header
LB: loop body
LE: loop exit
PB: predicated region body
PF: predicated region fallthrough
CT: control target
= control target key end

     0   :  { %12 = vsyncpa [#allocation3], 0  ;;  %s636_s0 = inlined_call_operand.vmem [shape: f32[8,32], index: 0, kind: input, shape index: {}]   ;;  %s637_s1 = inlined_call_operand.hbm [shape: f32[32,64], index: 1, kind: input, shape index: {}]   ;;  %s638_s2 = inlined_call_operand.vmem [shape: f32[1,64], index: 2, kind: input, shape index: {}]   ;;  %s639_s3 = inlined_call_operand.vmem [shape: f32[64,64], index: 3, kind: input, shape index: {}]   ;;  %s640_s4 = inlined_call_operand.vmem [shape: f32[1,64], index: 4, kind: input, shape index: {}]   ;;  %s641_s5 = inlined_call_operand.vmem [shape: f32[64,8], index: 5, kind: input, shape index: {}]   ;;  %s642_s6 = inlined_call_operand.vmem [shape: f32[1,8], index: 6, kind: input, shape index: {}]   ;;  %s643_s7 = inlined_call_operand.hbm [shape: f32[8,8], index: 7, kind: output, shape index: {}]  }
   0x1   :  { %13 = vsyncpa [#allocation4], 0  ;;  %s490_s24 = smov [#allocation2]   ;;  %s442_s28 = scalar_lea.hbm %s637_s1, 512 }
   0x2   :  { %s21_s25 = sshll.u32 %s490_s24, 4  ;;  %p443_p0 = scmp.ne.s32.totalorder %s637_s1, %s442_s28  ;;  %s22_s25 = int_to_ptr.vmem [resolvable:$true] %s21_s25 }
   0x3   :  { %p446_p1 = scmp.lt.u32.totalorder %s442_s28, %s637_s1 }
   0x5   :  { %p448_p2 = pnand %p446_p1, %p443_p0 }
   0x7   :  { %451 = shalt.err (!%p448_p2)
}
   0x8   :  { %s452_s10 = scalar_lea.vmem %s22_s25, 512  ;;  %p457_p4 = scmp.lt.s32.totalorder %s22_s25, %s22_s25 }
   0x9   :  { %p453_p3 = scmp.ne.s32.totalorder %s22_s25, %s452_s10  ;;  %p458_p5 = scmp.lt.s32.totalorder %s452_s10, %s452_s10 }
   0xb   :  { %p459_p6 = por %p458_p5, %p457_p4 }
   0xd   :  { %p460_p7 = pnand %p459_p6, %p453_p3 }
   0xf   :  { %463 = shalt.err (!%p460_p7)
}
  0x10   :  { %s491_s11 = smov 128   ;;  %s492_s12 = smov 8  }
  0x11   :  { %27 = dma.hbm_to_vmem [thread:$0]  %s637_s1, 512, %s22_s25, [#allocation3], %s491_s11, %s491_s11, %s492_s12  }
  0x12   :  { %486 = dma.done.wait [#allocation3], 512  }
  0x13   :  { %487 = vsyncadd [#allocation3], 4294966784  ;;  %v493_v0 = vmov 0.0|0.0   ;;  %vm494_vm0 = vmmov 0   ;;  %v495_v1 = vmov 0.0   ;;  %v42_v2 = vld [vmem:[#allocation2] sm:$0xff] }
  0x14   :  { %401 = vmatprep.subr.bf16.mxu0 %v493_v0  ;;  %360 = vmatprep.mubr.msk.f32.mxu0 %vm494_vm0, %v495_v1  ;;  %v43_v3 = vld [vmem:[#allocation2 + $0x8] sm:$0xff]  ;;  %v44_v4 = vld [vmem:[#allocation2 + $0x10] sm:$0xff]  ;;  %v45_v6 = vld [vmem:[#allocation2 + $0x18] sm:$0xff]  ;;  %vm53_vm1 = vcmask 261120   ;;  %vm143_vm2 = vcmask 523264   ;;  %vm306_vm3 = vcmask 64512  }
  0x15   :  { %407 = vmatprep.subr.bf16.mxu1 %v493_v0  ;;  %379 = vmatprep.mubr.msk.f32.mxu1 %vm494_vm0, %v495_v1  ;;  %v402_v5 = vpack.c.bf16 %v43_v3, %v42_v2  ;;  %v128_v7 = vld [vmem:[%s639_s3] sm:$0xff]  ;;  %v129_v8 = vld [vmem:[%s639_s3 + $0x8] sm:$0xff]  ;;  %v405_v9 = vpack.c.bf16 %v45_v6, %v44_v4  ;;  %v130_v12 = vld [vmem:[%s639_s3 + $0x10] sm:$0xff] }
  0x16   :  { %v408_v10 = vpack.c.bf16 %v129_v8, %v128_v7  ;;  %v41_v11 = vld [vmem:[%s636_s0] sm:$0xff]  ;;  %v131_v13 = vld [vmem:[%s639_s3 + $0x18] sm:$0xff]  ;;  %v133_v16 = vld [vmem:[%s639_s3 + $0x28] sm:$0xff] }
  0x17   :  { %403 = vmatpush3.bf16.msra.mxu0 %v402_v5  ;;  %v411_v14 = vpack.c.bf16 %v131_v13, %v130_v12  ;;  %v132_v15 = vld [vmem:[%s639_s3 + $0x20] sm:$0xff]  ;;  %v134_v18 = vld [vmem:[%s639_s3 + $0x30] sm:$0xff]  ;;  %v135_v19 = vld [vmem:[%s639_s3 + $0x38] sm:$0xff] }
  0x18   :  { %404 = vmatprep.subr.bf16.mxu0 %v493_v0  ;;  %409 = vmatpush3.bf16.msra.mxu1 %v408_v10  ;;  %v414_v17 = vpack.c.bf16 %v133_v16, %v132_v15  ;;  %v417_v20 = vpack.c.bf16 %v135_v19, %v134_v18  ;;  %v218_v21 = vld [vmem:[%s641_s5] sm:$0xff]  ;;  %v219_v22 = vld [vmem:[%s641_s5 + $0x8] sm:$0xff]  ;;  %v220_v29 = vld [vmem:[%s641_s5 + $0x10] sm:$0xff] }
  0x19   :  { %410 = vmatprep.subr.bf16.mxu1 %v493_v0  ;;  %v420_v23 = vpack.c.bf16 %v219_v22, %v218_v21  ;;  %v323_v24 = vld [vmem:[%s638_s2] ss:$0 sm:$0xff]  ;;  %v221_v30 = vld [vmem:[%s641_s5 + $0x18] sm:$0xff]  ;;  %v223_v33 = vld [vmem:[%s641_s5 + $0x28] sm:$0xff] }
  0x1a   :  { %v423_v31 = vpack.c.bf16 %v221_v30, %v220_v29  ;;  %v222_v32 = vld [vmem:[%s641_s5 + $0x20] sm:$0xff]  ;;  %v224_v35 = vld [vmem:[%s641_s5 + $0x30] sm:$0xff]  ;;  %v225_v36 = vld [vmem:[%s641_s5 + $0x38] sm:$0xff]  ;;  %s496_s5 = smov [#allocation5]  }
  0x1b   :  { %406 = vmatpush3.bf16.msra.mxu0 %v405_v9  ;;  %v426_v34 = vpack.c.bf16 %v223_v33, %v222_v32  ;;  %v429_v37 = vpack.c.bf16 %v225_v36, %v224_v35  ;;  %v325_v38 = vld [vmem:[%s640_s4] ss:$0 sm:$0xff]  ;;  %s314_s26 = sshll.u32 %s496_s5, 4  ;;  %s315_s26 = int_to_ptr.vmem [resolvable:$true] %s314_s26 }
  0x1c   :  { %419 = vmatprep.subr.bf16.mxu0 %v493_v0  ;;  %412 = vmatpush3.bf16.msra.mxu1 %v411_v14  ;;  %v327_v43 = vld [vmem:[%s642_s6] ss:$0 sm:$0xff]  ;;  %s464_s4 = scalar_lea.vmem %s315_s26, 128  ;;  %p469_p9 = scmp.lt.s32.totalorder %s315_s26, %s315_s26 }
  0x1d   :  { %413 = vmatprep.subr.bf16.mxu1 %v493_v0  ;;  %p465_p8 = scmp.ne.s32.totalorder %s315_s26, %s464_s4  ;;  %p470_p10 = scmp.lt.s32.totalorder %s464_s4, %s464_s4 }
  0x1e   :  { %361 = vmatmul.mubr.msk.f32.vlgmr.msra.gmra.mrb[0].mxu0 %vm53_vm1, %v41_v11 }
  0x1f   :  { %398 = vmatprep.mubr.msk.f32.mxu0 %vm494_vm0, %v495_v1  ;;  %421 = vmatpush3.bf16.msra.mxu0 %v420_v23  ;;  %p471_p11 = por %p470_p10, %p469_p9 }
  0x20   :  { %415 = vmatpush3.bf16.msra.mxu1 %v414_v17  ;;  %422 = vmatprep.subr.bf16.mxu0 %v493_v0 }
  0x21   :  { %416 = vmatprep.subr.bf16.mxu1 %v493_v0  ;;  %p472_p12 = pnand %p471_p11, %p465_p8 }
  0x23   :  { %424 = vmatpush3.bf16.msra.mxu0 %v423_v31 }
  0x24   :  { %418 = vmatpush3.bf16.msra.mxu1 %v417_v20  ;;  %425 = vmatprep.subr.bf16.mxu0 %v493_v0 }
  0x27   :  { %427 = vmatpush3.bf16.msra.mxu0 %v426_v34 }
  0x28   :  { %428 = vmatprep.subr.bf16.mxu0 %v493_v0 }
  0x2b   :  { %430 = vmatpush3.bf16.msra.mxu0 %v429_v37 }
  0xf1   :  { %v123_v25 = vpop.f32.mrb[0].mxu0 }
  0xf2   :  { %v124_v26 = vadd.f32 %v323_v24, %v123_v25  ;;  %v362_v27 = vpop.f32.mrb[1].mxu0 }
  0xf4   :  { %438 = vtanh.f32 %v124_v26 }
  0xfe   :  { %v439_v28 = vpop.eup %438 }
  0xff   :  { %380 = vmatmul.mubr.msk.f32.vlgmr.msra.gmra.mrb[0].mxu1 %vm143_vm2, %v439_v28 }
 0x1d2   :  { %v213_v39 = vpop.f32.mrb[0].mxu1 }
 0x1d3   :  { %v214_v40 = vadd.f32 %v325_v38, %v213_v39  ;;  %v381_v41 = vpop.f32.mrb[1].mxu1 }
 0x1d5   :  { %440 = vtanh.f32 %v214_v40 }
 0x1df   :  { %v441_v42 = vpop.eup %440 }
 0x1e0   :  { %399 = vmatmul.mubr.msk.f32.vlgmr.msra.gmra.mrb[2].mxu0 %vm143_vm2, %v441_v42 }
 0x2b3   :  { %v302_v44 = vpop.f32.mrb[2].mxu0 }
 0x2b4   :  { %v303_v45 = vadd.f32 %v327_v43, %v302_v44  ;;  %v400_v46 = vpop.f32.mrb[3].mxu0 }
 0x2b6   :  { %307 = vst.msk [vmem:[#allocation5] sm:$0xff] %vm306_vm3, %v303_v45 }
 0x2b7   :  { %475 = shalt.err (!%p472_p12)
}
 0x2b8   :  { %s476_s29 = scalar_lea.hbm %s643_s7, 128 }
 0x2b9   :  { %p477_p13 = scmp.ne.s32.totalorder %s643_s7, %s476_s29  ;;  %p480_p0 = scmp.lt.u32.totalorder %s476_s29, %s643_s7 }
 0x2bb   :  { %p482_p1 = pnand %p480_p0, %p477_p13 }
 0x2bd   :  { %485 = shalt.err (!%p482_p1)
}
 0x2be   :  { %317 = dma.vmem_to_hbm [thread:$0]  %s315_s26, 128, %s643_s7, [#allocation4]  }
 0x2bf   :  { %488 = dma.done.wait [#allocation4], 128  }
 0x2c0   :  { %489 = vsyncadd [#allocation4], 4294967168 }
 0x2c1   :  { %321 = vsyncpa [#allocation3], 1 }
 0x2c2   :  { %322 = vsyncpa [#allocation4], 1 }

</bundles_post_ra>
